<compile_context>
chip_gen: v7x
topology: tpu7x:2x2x1
jax: 0.10.0
libtpu: 0.0.40
codegen_flags: <defaults>
</compile_context>

<pallas_src>
import jax
import jax.numpy as jnp
from jax import lax
from jax.experimental import pallas as pl
from jax.experimental.pallas import tpu as pltpu

# Small, module-consistent sizes.
B, L, E, H, CSIZE = 2, 8, 32, 4, 16
S = E // H          # head dim
FF = 4 * E          # ff hidden (ff_hidden_mult=4)
BL = B * L
LN_EPS = 1e-5       # torch.nn.LayerNorm default

# ---- packed-slab layout (built once at init, not per forward call) ----------
# Weight slab (W_ROWS, 128): every weight starts at a sublane offset that is a
# multiple of 8 so the in-kernel static views stay tile-aligned.
R_CW1  = 0                   # (CSIZE, 2*CSIZE)   to_cond layer 1
R_CW2  = R_CW1 + CSIZE       # (2*CSIZE, E)       to_cond layer 2
R_WQKV = R_CW2 + 2 * CSIZE   # (E, 3E)            fused Q|K|V (Q pre-scaled)
R_WO   = R_WQKV + E          # (E, E)             attention output projection
R_WF1  = R_WO + E            # (E, FF)            FF layer 1
R_WF2  = R_WF1 + E           # (FF, E)            FF layer 2
W_ROWS = R_WF2 + FF          # = 272
W_COLS = 128                 # = max(3E, FF), the natural lane width

# Constants slab (K_ROWS, 128): additive attention bias + all 1-row vectors.
R_BIAS = 0                   # (BL, BL) block-diagonal causal additive mask
R_VEC  = BL                  # 9 rows: cb1 cb2 bo g1 be1 g2 be2 bf1 bf2
K_ROWS = R_VEC + 9
K_COLS = 128


def _layernorm(x, gamma, beta):
    mu = jnp.mean(x, axis=-1, keepdims=True)
    var = jnp.mean(jnp.square(x - mu), axis=-1, keepdims=True)   # biased, like torch
    return (x - mu) * lax.rsqrt(var + LN_EPS) * gamma + beta


# -----------------------------------------------------------------------------
# Single fused kernel: cond MLP + transformer block + adapter combine.
# -----------------------------------------------------------------------------
def adapter_block_kernel(mult_ref, x_ref, c_ref, w_ref, k_ref, o_ref):
    f32 = jnp.float32

    # Static views into the packed weight slab (one DMA for all weights).
    cw1  = w_ref[R_CW1:R_CW1 + CSIZE, 0:2 * CSIZE]
    cw2  = w_ref[R_CW2:R_CW2 + 2 * CSIZE, 0:E]
    wqkv = w_ref[R_WQKV:R_WQKV + E, 0:3 * E]
    wo   = w_ref[R_WO:R_WO + E, 0:E]
    wf1  = w_ref[R_WF1:R_WF1 + E, 0:FF]
    wf2  = w_ref[R_WF2:R_WF2 + FF, 0:E]

    # Static views into the constants slab.
    bias = k_ref[R_BIAS:R_BIAS + BL, 0:BL]            # (BL, BL) additive mask
    cb1 = k_ref[R_VEC + 0:R_VEC + 1, 0:2 * CSIZE]
    cb2 = k_ref[R_VEC + 1:R_VEC + 2, 0:E]
    bo  = k_ref[R_VEC + 2:R_VEC + 3, 0:E]
    g1  = k_ref[R_VEC + 3:R_VEC + 4, 0:E]
    be1 = k_ref[R_VEC + 4:R_VEC + 5, 0:E]
    g2  = k_ref[R_VEC + 5:R_VEC + 6, 0:E]
    be2 = k_ref[R_VEC + 6:R_VEC + 7, 0:E]
    bf1 = k_ref[R_VEC + 7:R_VEC + 8, 0:FF]
    bf2 = k_ref[R_VEC + 8:R_VEC + 9, 0:E]

    x = x_ref[...]                                    # (BL, E)

    # --- to_cond MLP on sequence-replicated rows (one MXU push per layer) ---
    ch = jnp.maximum(jnp.dot(c_ref[...], cw1, preferred_element_type=f32) + cb1, 0.0)
    cond = jnp.dot(ch, cw2, preferred_element_type=f32) + cb2       # (BL, E)
    xc = x + cond

    # --- fused QKV projection: one (BL,E)@(E,3E) matmul; Q pre-scaled ---
    qkv = jnp.dot(xc, wqkv, preferred_element_type=f32)             # (BL, 3E)

    # --- multi-head causal self-attention, batch folded into the row dim ---
    attended = jnp.zeros((BL, E), f32)
    for h in range(H):
        qh = qkv[:, h * S:(h + 1) * S]                              # (BL, S)
        kh = qkv[:, E + h * S:E + (h + 1) * S]                      # (BL, S)
        vh = qkv[:, 2 * E + h * S:2 * E + (h + 1) * S]              # (BL, S)
        # scores: single matmul contracting the head dim of both operands;
        # batch separation + causality live in the precomputed additive bias.
        att = lax.dot_general(qh, kh, (((1,), (1,)), ((), ())),
                              preferred_element_type=f32) + bias    # (BL, BL)
        m = jnp.max(att, axis=-1, keepdims=True)
        e = jnp.exp(att - m)
        p = e / jnp.sum(e, axis=-1, keepdims=True)                  # exact softmax
        oh = jnp.dot(p, vh, preferred_element_type=f32)             # (BL, S)
        # fold the output projection into a per-head accumulate (no lane concat)
        attended = attended + jnp.dot(oh, wo[h * S:(h + 1) * S, :],
                                      preferred_element_type=f32)
    attended = attended + bo

    # residual + norm1
    y = _layernorm(attended + xc, g1, be1)
    # feed-forward
    ff = jnp.maximum(jnp.dot(y, wf1, preferred_element_type=f32) + bf1, 0.0)
    ff = jnp.dot(ff, wf2, preferred_element_type=f32) + bf2
    # residual + norm2
    blk = _layernorm(ff + y, g2, be2)

    # adapter combine: r = mult * block(xc) + x   (single contiguous slab store)
    o_ref[...] = mult_ref[0] * blk + x


@jax.jit
def adapter_block(x, c, mult, w_slab, k_slab):
    # Shape plumbing at the XLA level (free): kernel stays fully 2-D.
    x2 = x.reshape(BL, E)
    c2 = jnp.repeat(c, L, axis=0)          # replicate conditional over sequence
    vmem = pl.BlockSpec(memory_space=pltpu.VMEM)
    out = pl.pallas_call(
        adapter_block_kernel,
        out_shape=jax.ShapeDtypeStruct((BL, E), jnp.float32),
        in_specs=[pl.BlockSpec(memory_space=pltpu.SMEM), vmem, vmem, vmem, vmem],
        out_specs=vmem,
    )(mult, x2, c2, w_slab, k_slab)
    return out.reshape(B, L, E)


# -----------------------------------------------------------------------------
# One-time parameter packing (init time, NOT per forward call).
# -----------------------------------------------------------------------------
def _attn_bias():
    idx = jnp.arange(BL)
    same_batch = (idx[:, None] // L) == (idx[None, :] // L)
    causal = (idx[None, :] % L) <= (idx[:, None] % L)
    return jnp.where(same_batch & causal, 0.0, -1e30).astype(jnp.float32)


def pack_params(p):
    scale = 1.0 / (E ** 0.5)               # fold score scale into Q columns
    wqkv = jnp.concatenate([p["wq"] * scale, p["wk"], p["wv"]], axis=1)

    w = jnp.zeros((W_ROWS, W_COLS), jnp.float32)
    w = w.at[R_CW1:R_CW1 + CSIZE, 0:2 * CSIZE].set(p["cw1"])
    w = w.at[R_CW2:R_CW2 + 2 * CSIZE, 0:E].set(p["cw2"])
    w = w.at[R_WQKV:R_WQKV + E, 0:3 * E].set(wqkv)
    w = w.at[R_WO:R_WO + E, 0:E].set(p["wo"])
    w = w.at[R_WF1:R_WF1 + E, 0:FF].set(p["wf1"])
    w = w.at[R_WF2:R_WF2 + FF, 0:E].set(p["wf2"])

    k = jnp.zeros((K_ROWS, K_COLS), jnp.float32)
    k = k.at[R_BIAS:R_BIAS + BL, 0:BL].set(_attn_bias())
    for r, (name, width) in enumerate([("cb1", 2 * CSIZE), ("cb2", E), ("bo", E),
                                       ("g1", E), ("be1", E), ("g2", E),
                                       ("be2", E), ("bf1", FF), ("bf2", E)]):
        k = k.at[R_VEC + r, 0:width].set(p[name][0])
    return w, k


# -----------------------------------------------------------------------------
# Pure-JAX reference (same math, unpacked params) for a correctness check.
# -----------------------------------------------------------------------------
def reference(x, c, mult, p):
    h = jnp.maximum(c @ p["cw1"] + p["cb1"], 0.0)
    cond = h @ p["cw2"] + p["cb2"]                                # (B, E)
    xc = x + cond[:, None, :]

    q = xc @ p["wq"]; k = xc @ p["wk"]; v = xc @ p["wv"]
    q = q.reshape(B, L, H, S); k = k.reshape(B, L, H, S); v = v.reshape(B, L, H, S)
    att = jnp.einsum("bqhs,bkhs->bhqk", q, k) / (E ** 0.5)
    row = lax.broadcasted_iota(jnp.int32, (L, L), 0)
    col = lax.broadcasted_iota(jnp.int32, (L, L), 1)
    att = jnp.where(col <= row, att, -1e30)
    att = jax.nn.softmax(att, axis=-1)
    out = jnp.einsum("bhqk,bkhs->bqhs", att, v).reshape(B, L, E)
    attended = out @ p["wo"] + p["bo"]

    y = _layernorm(attended + xc, p["g1"], p["be1"])
    ff = jnp.maximum(y @ p["wf1"] + p["bf1"], 0.0) @ p["wf2"] + p["bf2"]
    blk = _layernorm(ff + y, p["g2"], p["be2"])
    return mult[0] * blk + x


def init_params(key):
    ks = jax.random.split(key, 16)
    n = lambda k, shape, s=0.05: (s * jax.random.normal(k, shape)).astype(jnp.float32)
    return {
        # to_cond MLP
        "cw1": n(ks[0], (CSIZE, 2 * CSIZE)), "cb1": n(ks[1], (1, 2 * CSIZE)),
        "cw2": n(ks[2], (2 * CSIZE, E)),     "cb2": n(ks[3], (1, E)),
        # attention
        "wq": n(ks[4], (E, E)), "wk": n(ks[5], (E, E)), "wv": n(ks[6], (E, E)),
        "wo": n(ks[7], (E, E)), "bo": n(ks[8], (1, E)),
        # layernorms (torch default init: gamma=1, beta=0)
        "g1": jnp.ones((1, E), jnp.float32), "be1": jnp.zeros((1, E), jnp.float32),
        "g2": jnp.ones((1, E), jnp.float32), "be2": jnp.zeros((1, E), jnp.float32),
        # feed-forward
        "wf1": n(ks[9], (E, FF)),  "bf1": n(ks[10], (1, FF)),
        "wf2": n(ks[11], (FF, E)), "bf2": n(ks[12], (1, E)),
    }


if __name__ == "__main__":
    key = jax.random.PRNGKey(0)
    kx, kc, kp = jax.random.split(key, 3)

    x = jax.random.normal(kx, (B, L, E), dtype=jnp.float32)
    c = jax.random.normal(kc, (B, CSIZE), dtype=jnp.float32)
    params = init_params(kp)
    # nn.Parameter(torch.tensor([mult])): default 0.0 would zero the block;
    # use a nonzero deterministic value so the kernel compute is exercised.
    mult = jnp.array([0.5], dtype=jnp.float32)

    # Init-time packing (weights, biases, fused QKV + folded scale, attn bias).
    w_slab, k_slab = pack_params(params)

    r = jax.block_until_ready(adapter_block(x, c, mult, w_slab, k_slab))
    r_ref = jax.block_until_ready(reference(x, c, mult, params))

    assert r.shape == (B, L, E)
    err = float(jnp.max(jnp.abs(r - r_ref)))
    assert jnp.allclose(r, r_ref, atol=2e-3, rtol=2e-3), err

    print("KERNEL_OK")
</pallas_src>

<mosaic_0001>
module attributes {stable_mosaic.version = 11 : i64} {
  func.func @adapter_block_kernel(%arg0: memref<1xf32, #tpu.memory_space<smem>>, %arg1: memref<16x32xf32, #tpu.memory_space<vmem>>, %arg2: memref<16x16xf32, #tpu.memory_space<vmem>>, %arg3: memref<272x128xf32, #tpu.memory_space<vmem>>, %arg4: memref<25x128xf32, #tpu.memory_space<vmem>>, %arg5: memref<16x32xf32, #tpu.memory_space<vmem>>) attributes {dimension_semantics = [], scalar_prefetch = 0 : i64, scratch_operands = 0 : i64, tpu.core_type = #tpu.core_type<tc>} {
    %c0 = arith.constant 0 : index
    %c0_0 = arith.constant 0 : index
    %0 = vector.load %arg3[%c0, %c0_0] : memref<272x128xf32, #tpu.memory_space<vmem>>, vector<16x32xf32>
    %c16 = arith.constant 16 : index
    %c0_1 = arith.constant 0 : index
    %1 = vector.load %arg3[%c16, %c0_1] : memref<272x128xf32, #tpu.memory_space<vmem>>, vector<32x32xf32>
    %c48 = arith.constant 48 : index
    %c0_2 = arith.constant 0 : index
    %2 = vector.load %arg3[%c48, %c0_2] : memref<272x128xf32, #tpu.memory_space<vmem>>, vector<32x96xf32>
    %c80 = arith.constant 80 : index
    %c0_3 = arith.constant 0 : index
    %3 = vector.load %arg3[%c80, %c0_3] : memref<272x128xf32, #tpu.memory_space<vmem>>, vector<32x32xf32>
    %c112 = arith.constant 112 : index
    %c0_4 = arith.constant 0 : index
    %4 = vector.load %arg3[%c112, %c0_4] : memref<272x128xf32, #tpu.memory_space<vmem>>, vector<32x128xf32>
    %c144 = arith.constant 144 : index
    %c0_5 = arith.constant 0 : index
    %5 = vector.load %arg3[%c144, %c0_5] : memref<272x128xf32, #tpu.memory_space<vmem>>, vector<128x32xf32>
    %c0_6 = arith.constant 0 : index
    %c0_7 = arith.constant 0 : index
    %6 = vector.load %arg4[%c0_6, %c0_7] : memref<25x128xf32, #tpu.memory_space<vmem>>, vector<16x16xf32>
    %c16_8 = arith.constant 16 : index
    %c0_9 = arith.constant 0 : index
    %7 = vector.load %arg4[%c16_8, %c0_9] : memref<25x128xf32, #tpu.memory_space<vmem>>, vector<1x32xf32>
    %c17 = arith.constant 17 : index
    %c0_10 = arith.constant 0 : index
    %8 = vector.load %arg4[%c17, %c0_10] : memref<25x128xf32, #tpu.memory_space<vmem>>, vector<1x32xf32>
    %c18 = arith.constant 18 : index
    %c0_11 = arith.constant 0 : index
    %9 = vector.load %arg4[%c18, %c0_11] : memref<25x128xf32, #tpu.memory_space<vmem>>, vector<1x32xf32>
    %c19 = arith.constant 19 : index
    %c0_12 = arith.constant 0 : index
    %10 = vector.load %arg4[%c19, %c0_12] : memref<25x128xf32, #tpu.memory_space<vmem>>, vector<1x32xf32>
    %c20 = arith.constant 20 : index
    %c0_13 = arith.constant 0 : index
    %11 = vector.load %arg4[%c20, %c0_13] : memref<25x128xf32, #tpu.memory_space<vmem>>, vector<1x32xf32>
    %c21 = arith.constant 21 : index
    %c0_14 = arith.constant 0 : index
    %12 = vector.load %arg4[%c21, %c0_14] : memref<25x128xf32, #tpu.memory_space<vmem>>, vector<1x32xf32>
    %c22 = arith.constant 22 : index
    %c0_15 = arith.constant 0 : index
    %13 = vector.load %arg4[%c22, %c0_15] : memref<25x128xf32, #tpu.memory_space<vmem>>, vector<1x32xf32>
    %c23 = arith.constant 23 : index
    %c0_16 = arith.constant 0 : index
    %14 = vector.load %arg4[%c23, %c0_16] : memref<25x128xf32, #tpu.memory_space<vmem>>, vector<1x128xf32>
    %c24 = arith.constant 24 : index
    %c0_17 = arith.constant 0 : index
    %15 = vector.load %arg4[%c24, %c0_17] : memref<25x128xf32, #tpu.memory_space<vmem>>, vector<1x32xf32>
    %c0_18 = arith.constant 0 : index
    %c0_19 = arith.constant 0 : index
    %16 = vector.load %arg1[%c0_18, %c0_19] : memref<16x32xf32, #tpu.memory_space<vmem>>, vector<16x32xf32>
    %c0_20 = arith.constant 0 : index
    %c0_21 = arith.constant 0 : index
    %17 = vector.load %arg2[%c0_20, %c0_21] : memref<16x16xf32, #tpu.memory_space<vmem>>, vector<16x16xf32>
    %cst = arith.constant dense<0.000000e+00> : vector<16x32xf32>
    %18 = tpu.matmul %17, %0, %cst {dimension_numbers = #tpu.dot_dimension_numbers<[1], [0], [0], [1], [0, 0, 1, 1], [], []>} : vector<16x16xf32>, vector<16x32xf32>, vector<16x32xf32> -> vector<16x32xf32>
    %19 = vector.broadcast %7 : vector<1x32xf32> to vector<16x32xf32>
    %20 = arith.addf %18, %19 : vector<16x32xf32>
    %cst_22 = arith.constant 0.000000e+00 : f32
    %21 = vector.broadcast %cst_22 : f32 to vector<16x32xf32>
    %22 = arith.maximumf %20, %21 : vector<16x32xf32>
    %cst_23 = arith.constant dense<0.000000e+00> : vector<16x32xf32>
    %23 = tpu.matmul %22, %1, %cst_23 {dimension_numbers = #tpu.dot_dimension_numbers<[1], [0], [0], [1], [0, 0, 1, 1], [], []>} : vector<16x32xf32>, vector<32x32xf32>, vector<16x32xf32> -> vector<16x32xf32>
    %24 = vector.broadcast %8 : vector<1x32xf32> to vector<16x32xf32>
    %25 = arith.addf %23, %24 : vector<16x32xf32>
    %26 = arith.addf %16, %25 : vector<16x32xf32>
    %cst_24 = arith.constant dense<0.000000e+00> : vector<16x96xf32>
    %27 = tpu.matmul %26, %2, %cst_24 {dimension_numbers = #tpu.dot_dimension_numbers<[1], [0], [0], [1], [0, 0, 1, 1], [], []>} : vector<16x32xf32>, vector<32x96xf32>, vector<16x96xf32> -> vector<16x96xf32>
    %cst_25 = arith.constant 0.000000e+00 : f32
    %28 = vector.broadcast %cst_25 : f32 to vector<16x32xf32>
    %29 = vector.extract_strided_slice %27 {offsets = [0, 0], sizes = [16, 8], strides = [1, 1]} : vector<16x96xf32> to vector<16x8xf32>
    %30 = vector.extract_strided_slice %27 {offsets = [0, 32], sizes = [16, 8], strides = [1, 1]} : vector<16x96xf32> to vector<16x8xf32>
    %31 = vector.extract_strided_slice %27 {offsets = [0, 64], sizes = [16, 8], strides = [1, 1]} : vector<16x96xf32> to vector<16x8xf32>
    %cst_26 = arith.constant dense<0.000000e+00> : vector<16x16xf32>
    %32 = tpu.matmul %29, %30, %cst_26 {dimension_numbers = #tpu.dot_dimension_numbers<[1], [1], [0], [0], [0, 0, 1, 0], [], []>} : vector<16x8xf32>, vector<16x8xf32>, vector<16x16xf32> -> vector<16x16xf32>
    %33 = arith.addf %32, %6 : vector<16x16xf32>
    %cst_27 = arith.constant dense<0xFF800000> : vector<16xf32>
    %34 = vector.multi_reduction <maximumf>, %33, %cst_27 [1] : vector<16x16xf32> to vector<16xf32>
    %35 = vector.shape_cast %34 : vector<16xf32> to vector<16x1xf32>
    %36 = vector.broadcast %35 : vector<16x1xf32> to vector<16x16xf32>
    %37 = arith.subf %33, %36 : vector<16x16xf32>
    %38 = math.exp %37 : vector<16x16xf32>
    %cst_28 = arith.constant dense<0.000000e+00> : vector<16xf32>
    %39 = vector.multi_reduction <add>, %38, %cst_28 [1] : vector<16x16xf32> to vector<16xf32>
    %40 = vector.shape_cast %39 : vector<16xf32> to vector<16x1xf32>
    %41 = vector.broadcast %40 : vector<16x1xf32> to vector<16x16xf32>
    %42 = arith.divf %38, %41 : vector<16x16xf32>
    %cst_29 = arith.constant dense<0.000000e+00> : vector<16x8xf32>
    %43 = tpu.matmul %42, %31, %cst_29 {dimension_numbers = #tpu.dot_dimension_numbers<[1], [0], [0], [1], [0, 0, 1, 1], [], []>} : vector<16x16xf32>, vector<16x8xf32>, vector<16x8xf32> -> vector<16x8xf32>
    %44 = vector.extract_strided_slice %3 {offsets = [0, 0], sizes = [8, 32], strides = [1, 1]} : vector<32x32xf32> to vector<8x32xf32>
    %cst_30 = arith.constant dense<0.000000e+00> : vector<16x32xf32>
    %45 = tpu.matmul %43, %44, %cst_30 {dimension_numbers = #tpu.dot_dimension_numbers<[1], [0], [0], [1], [0, 0, 1, 1], [], []>} : vector<16x8xf32>, vector<8x32xf32>, vector<16x32xf32> -> vector<16x32xf32>
    %46 = arith.addf %28, %45 : vector<16x32xf32>
    %47 = vector.extract_strided_slice %27 {offsets = [0, 8], sizes = [16, 8], strides = [1, 1]} : vector<16x96xf32> to vector<16x8xf32>
    %48 = vector.extract_strided_slice %27 {offsets = [0, 40], sizes = [16, 8], strides = [1, 1]} : vector<16x96xf32> to vector<16x8xf32>
    %49 = vector.extract_strided_slice %27 {offsets = [0, 72], sizes = [16, 8], strides = [1, 1]} : vector<16x96xf32> to vector<16x8xf32>
    %cst_31 = arith.constant dense<0.000000e+00> : vector<16x16xf32>
    %50 = tpu.matmul %47, %48, %cst_31 {dimension_numbers = #tpu.dot_dimension_numbers<[1], [1], [0], [0], [0, 0, 1, 0], [], []>} : vector<16x8xf32>, vector<16x8xf32>, vector<16x16xf32> -> vector<16x16xf32>
    %51 = arith.addf %50, %6 : vector<16x16xf32>
    %cst_32 = arith.constant dense<0xFF800000> : vector<16xf32>
    %52 = vector.multi_reduction <maximumf>, %51, %cst_32 [1] : vector<16x16xf32> to vector<16xf32>
    %53 = vector.shape_cast %52 : vector<16xf32> to vector<16x1xf32>
    %54 = vector.broadcast %53 : vector<16x1xf32> to vector<16x16xf32>
    %55 = arith.subf %51, %54 : vector<16x16xf32>
    %56 = math.exp %55 : vector<16x16xf32>
    %cst_33 = arith.constant dense<0.000000e+00> : vector<16xf32>
    %57 = vector.multi_reduction <add>, %56, %cst_33 [1] : vector<16x16xf32> to vector<16xf32>
    %58 = vector.shape_cast %57 : vector<16xf32> to vector<16x1xf32>
    %59 = vector.broadcast %58 : vector<16x1xf32> to vector<16x16xf32>
    %60 = arith.divf %56, %59 : vector<16x16xf32>
    %cst_34 = arith.constant dense<0.000000e+00> : vector<16x8xf32>
    %61 = tpu.matmul %60, %49, %cst_34 {dimension_numbers = #tpu.dot_dimension_numbers<[1], [0], [0], [1], [0, 0, 1, 1], [], []>} : vector<16x16xf32>, vector<16x8xf32>, vector<16x8xf32> -> vector<16x8xf32>
    %62 = vector.extract_strided_slice %3 {offsets = [8, 0], sizes = [8, 32], strides = [1, 1]} : vector<32x32xf32> to vector<8x32xf32>
    %cst_35 = arith.constant dense<0.000000e+00> : vector<16x32xf32>
    %63 = tpu.matmul %61, %62, %cst_35 {dimension_numbers = #tpu.dot_dimension_numbers<[1], [0], [0], [1], [0, 0, 1, 1], [], []>} : vector<16x8xf32>, vector<8x32xf32>, vector<16x32xf32> -> vector<16x32xf32>
    %64 = arith.addf %46, %63 : vector<16x32xf32>
    %65 = vector.extract_strided_slice %27 {offsets = [0, 16], sizes = [16, 8], strides = [1, 1]} : vector<16x96xf32> to vector<16x8xf32>
    %66 = vector.extract_strided_slice %27 {offsets = [0, 48], sizes = [16, 8], strides = [1, 1]} : vector<16x96xf32> to vector<16x8xf32>
    %67 = vector.extract_strided_slice %27 {offsets = [0, 80], sizes = [16, 8], strides = [1, 1]} : vector<16x96xf32> to vector<16x8xf32>
    %cst_36 = arith.constant dense<0.000000e+00> : vector<16x16xf32>
    %68 = tpu.matmul %65, %66, %cst_36 {dimension_numbers = #tpu.dot_dimension_numbers<[1], [1], [0], [0], [0, 0, 1, 0], [], []>} : vector<16x8xf32>, vector<16x8xf32>, vector<16x16xf32> -> vector<16x16xf32>
    %69 = arith.addf %68, %6 : vector<16x16xf32>
    %cst_37 = arith.constant dense<0xFF800000> : vector<16xf32>
    %70 = vector.multi_reduction <maximumf>, %69, %cst_37 [1] : vector<16x16xf32> to vector<16xf32>
    %71 = vector.shape_cast %70 : vector<16xf32> to vector<16x1xf32>
    %72 = vector.broadcast %71 : vector<16x1xf32> to vector<16x16xf32>
    %73 = arith.subf %69, %72 : vector<16x16xf32>
    %74 = math.exp %73 : vector<16x16xf32>
    %cst_38 = arith.constant dense<0.000000e+00> : vector<16xf32>
    %75 = vector.multi_reduction <add>, %74, %cst_38 [1] : vector<16x16xf32> to vector<16xf32>
    %76 = vector.shape_cast %75 : vector<16xf32> to vector<16x1xf32>
    %77 = vector.broadcast %76 : vector<16x1xf32> to vector<16x16xf32>
    %78 = arith.divf %74, %77 : vector<16x16xf32>
    %cst_39 = arith.constant dense<0.000000e+00> : vector<16x8xf32>
    %79 = tpu.matmul %78, %67, %cst_39 {dimension_numbers = #tpu.dot_dimension_numbers<[1], [0], [0], [1], [0, 0, 1, 1], [], []>} : vector<16x16xf32>, vector<16x8xf32>, vector<16x8xf32> -> vector<16x8xf32>
    %80 = vector.extract_strided_slice %3 {offsets = [16, 0], sizes = [8, 32], strides = [1, 1]} : vector<32x32xf32> to vector<8x32xf32>
    %cst_40 = arith.constant dense<0.000000e+00> : vector<16x32xf32>
    %81 = tpu.matmul %79, %80, %cst_40 {dimension_numbers = #tpu.dot_dimension_numbers<[1], [0], [0], [1], [0, 0, 1, 1], [], []>} : vector<16x8xf32>, vector<8x32xf32>, vector<16x32xf32> -> vector<16x32xf32>
    %82 = arith.addf %64, %81 : vector<16x32xf32>
    %83 = vector.extract_strided_slice %27 {offsets = [0, 24], sizes = [16, 8], strides = [1, 1]} : vector<16x96xf32> to vector<16x8xf32>
    %84 = vector.extract_strided_slice %27 {offsets = [0, 56], sizes = [16, 8], strides = [1, 1]} : vector<16x96xf32> to vector<16x8xf32>
    %85 = vector.extract_strided_slice %27 {offsets = [0, 88], sizes = [16, 8], strides = [1, 1]} : vector<16x96xf32> to vector<16x8xf32>
    %cst_41 = arith.constant dense<0.000000e+00> : vector<16x16xf32>
    %86 = tpu.matmul %83, %84, %cst_41 {dimension_numbers = #tpu.dot_dimension_numbers<[1], [1], [0], [0], [0, 0, 1, 0], [], []>} : vector<16x8xf32>, vector<16x8xf32>, vector<16x16xf32> -> vector<16x16xf32>
    %87 = arith.addf %86, %6 : vector<16x16xf32>
    %cst_42 = arith.constant dense<0xFF800000> : vector<16xf32>
    %88 = vector.multi_reduction <maximumf>, %87, %cst_42 [1] : vector<16x16xf32> to vector<16xf32>
    %89 = vector.shape_cast %88 : vector<16xf32> to vector<16x1xf32>
    %90 = vector.broadcast %89 : vector<16x1xf32> to vector<16x16xf32>
    %91 = arith.subf %87, %90 : vector<16x16xf32>
    %92 = math.exp %91 : vector<16x16xf32>
    %cst_43 = arith.constant dense<0.000000e+00> : vector<16xf32>
    %93 = vector.multi_reduction <add>, %92, %cst_43 [1] : vector<16x16xf32> to vector<16xf32>
    %94 = vector.shape_cast %93 : vector<16xf32> to vector<16x1xf32>
    %95 = vector.broadcast %94 : vector<16x1xf32> to vector<16x16xf32>
    %96 = arith.divf %92, %95 : vector<16x16xf32>
    %cst_44 = arith.constant dense<0.000000e+00> : vector<16x8xf32>
    %97 = tpu.matmul %96, %85, %cst_44 {dimension_numbers = #tpu.dot_dimension_numbers<[1], [0], [0], [1], [0, 0, 1, 1], [], []>} : vector<16x16xf32>, vector<16x8xf32>, vector<16x8xf32> -> vector<16x8xf32>
    %98 = vector.extract_strided_slice %3 {offsets = [24, 0], sizes = [8, 32], strides = [1, 1]} : vector<32x32xf32> to vector<8x32xf32>
    %cst_45 = arith.constant dense<0.000000e+00> : vector<16x32xf32>
    %99 = tpu.matmul %97, %98, %cst_45 {dimension_numbers = #tpu.dot_dimension_numbers<[1], [0], [0], [1], [0, 0, 1, 1], [], []>} : vector<16x8xf32>, vector<8x32xf32>, vector<16x32xf32> -> vector<16x32xf32>
    %100 = arith.addf %82, %99 : vector<16x32xf32>
    %101 = vector.broadcast %9 : vector<1x32xf32> to vector<16x32xf32>
    %102 = arith.addf %100, %101 : vector<16x32xf32>
    %103 = arith.addf %102, %26 : vector<16x32xf32>
    %cst_46 = arith.constant dense<0.000000e+00> : vector<16xf32>
    %104 = vector.multi_reduction <add>, %103, %cst_46 [1] : vector<16x32xf32> to vector<16xf32>
    %105 = vector.shape_cast %104 : vector<16xf32> to vector<16x1xf32>
    %cst_47 = arith.constant 3.200000e+01 : f32
    %106 = vector.broadcast %cst_47 : f32 to vector<16x1xf32>
    %107 = arith.divf %105, %106 : vector<16x1xf32>
    %108 = vector.broadcast %107 : vector<16x1xf32> to vector<16x32xf32>
    %109 = arith.subf %103, %108 : vector<16x32xf32>
    %110 = arith.mulf %109, %109 : vector<16x32xf32>
    %cst_48 = arith.constant dense<0.000000e+00> : vector<16xf32>
    %111 = vector.multi_reduction <add>, %110, %cst_48 [1] : vector<16x32xf32> to vector<16xf32>
    %112 = vector.shape_cast %111 : vector<16xf32> to vector<16x1xf32>
    %cst_49 = arith.constant 3.200000e+01 : f32
    %113 = vector.broadcast %cst_49 : f32 to vector<16x1xf32>
    %114 = arith.divf %112, %113 : vector<16x1xf32>
    %115 = vector.broadcast %107 : vector<16x1xf32> to vector<16x32xf32>
    %116 = arith.subf %103, %115 : vector<16x32xf32>
    %cst_50 = arith.constant 9.99999974E-6 : f32
    %117 = vector.broadcast %cst_50 : f32 to vector<16x1xf32>
    %118 = arith.addf %114, %117 : vector<16x1xf32>
    %119 = math.rsqrt %118 : vector<16x1xf32>
    %120 = vector.broadcast %119 : vector<16x1xf32> to vector<16x32xf32>
    %121 = arith.mulf %116, %120 : vector<16x32xf32>
    %122 = vector.broadcast %10 : vector<1x32xf32> to vector<16x32xf32>
    %123 = arith.mulf %121, %122 : vector<16x32xf32>
    %124 = vector.broadcast %11 : vector<1x32xf32> to vector<16x32xf32>
    %125 = arith.addf %123, %124 : vector<16x32xf32>
    %cst_51 = arith.constant dense<0.000000e+00> : vector<16x128xf32>
    %126 = tpu.matmul %125, %4, %cst_51 {dimension_numbers = #tpu.dot_dimension_numbers<[1], [0], [0], [1], [0, 0, 1, 1], [], []>} : vector<16x32xf32>, vector<32x128xf32>, vector<16x128xf32> -> vector<16x128xf32>
    %127 = vector.broadcast %14 : vector<1x128xf32> to vector<16x128xf32>
    %128 = arith.addf %126, %127 : vector<16x128xf32>
    %cst_52 = arith.constant 0.000000e+00 : f32
    %129 = vector.broadcast %cst_52 : f32 to vector<16x128xf32>
    %130 = arith.maximumf %128, %129 : vector<16x128xf32>
    %cst_53 = arith.constant dense<0.000000e+00> : vector<16x32xf32>
    %131 = tpu.matmul %130, %5, %cst_53 {dimension_numbers = #tpu.dot_dimension_numbers<[1], [0], [0], [1], [0, 0, 1, 1], [], []>} : vector<16x128xf32>, vector<128x32xf32>, vector<16x32xf32> -> vector<16x32xf32>
    %132 = vector.broadcast %15 : vector<1x32xf32> to vector<16x32xf32>
    %133 = arith.addf %131, %132 : vector<16x32xf32>
    %134 = arith.addf %133, %125 : vector<16x32xf32>
    %cst_54 = arith.constant dense<0.000000e+00> : vector<16xf32>
    %135 = vector.multi_reduction <add>, %134, %cst_54 [1] : vector<16x32xf32> to vector<16xf32>
    %136 = vector.shape_cast %135 : vector<16xf32> to vector<16x1xf32>
    %cst_55 = arith.constant 3.200000e+01 : f32
    %137 = vector.broadcast %cst_55 : f32 to vector<16x1xf32>
    %138 = arith.divf %136, %137 : vector<16x1xf32>
    %139 = vector.broadcast %138 : vector<16x1xf32> to vector<16x32xf32>
    %140 = arith.subf %134, %139 : vector<16x32xf32>
    %141 = arith.mulf %140, %140 : vector<16x32xf32>
    %cst_56 = arith.constant dense<0.000000e+00> : vector<16xf32>
    %142 = vector.multi_reduction <add>, %141, %cst_56 [1] : vector<16x32xf32> to vector<16xf32>
    %143 = vector.shape_cast %142 : vector<16xf32> to vector<16x1xf32>
    %cst_57 = arith.constant 3.200000e+01 : f32
    %144 = vector.broadcast %cst_57 : f32 to vector<16x1xf32>
    %145 = arith.divf %143, %144 : vector<16x1xf32>
    %146 = vector.broadcast %138 : vector<16x1xf32> to vector<16x32xf32>
    %147 = arith.subf %134, %146 : vector<16x32xf32>
    %cst_58 = arith.constant 9.99999974E-6 : f32
    %148 = vector.broadcast %cst_58 : f32 to vector<16x1xf32>
    %149 = arith.addf %145, %148 : vector<16x1xf32>
    %150 = math.rsqrt %149 : vector<16x1xf32>
    %151 = vector.broadcast %150 : vector<16x1xf32> to vector<16x32xf32>
    %152 = arith.mulf %147, %151 : vector<16x32xf32>
    %153 = vector.broadcast %12 : vector<1x32xf32> to vector<16x32xf32>
    %154 = arith.mulf %152, %153 : vector<16x32xf32>
    %155 = vector.broadcast %13 : vector<1x32xf32> to vector<16x32xf32>
    %156 = arith.addf %154, %155 : vector<16x32xf32>
    %c0_59 = arith.constant 0 : index
    %157 = memref.load %arg0[%c0_59] : memref<1xf32, #tpu.memory_space<smem>>
    %158 = vector.broadcast %157 : f32 to vector<16x32xf32>
    %159 = arith.mulf %158, %156 : vector<16x32xf32>
    %160 = arith.addf %159, %16 : vector<16x32xf32>
    %c0_60 = arith.constant 0 : index
    %c0_61 = arith.constant 0 : index
    %161 = vector.load %arg5[%c0_60, %c0_61] : memref<16x32xf32, #tpu.memory_space<vmem>>, vector<16x32xf32>
    tpu.vector_store %arg5[%c0_60, %c0_61], %160 {strides = array<i32>} : memref<16x32xf32, #tpu.memory_space<vmem>>, vector<16x32xf32>,
    return
  }
}

</mosaic_0001>

<bundles_post_ra>
// kernel: adapter_block.1
= control target key start
LH: loop header
LB: loop body
LE: loop exit
PB: predicated region body
PF: predicated region fallthrough
CT: control target
= control target key end

     0   :  { %11 = vsyncpa [#allocation4], 0  ;;  %s2596_s0 = inlined_call_operand.<no memory space> [shape: f32[1], index: 0, kind: input, shape index: {}]   ;;  %s2597_s1 = inlined_call_operand.hbm [shape: f32[16,32], index: 1, kind: input, shape index: {}]   ;;  %s2598_s2 = inlined_call_operand.vmem [shape: f32[16,16], index: 2, kind: input, shape index: {}]   ;;  %s2599_s3 = inlined_call_operand.hbm [shape: f32[272,128], index: 3, kind: input, shape index: {}]   ;;  %s2600_s4 = inlined_call_operand.vmem [shape: f32[25,128], index: 4, kind: input, shape index: {}]   ;;  %s2601_s5 = inlined_call_operand.hbm [shape: f32[16,32], index: 5, kind: output, shape index: {}]  }
   0x1   :  { %12 = vsyncpa [#allocation7], 0 }
   0x2   :  { %13 = vsyncpa [#allocation5], 0  ;;  %s2320_s18 = smov [#allocation3]   ;;  %s2248_s22 = scalar_lea.hbm %s2597_s1, 256 }
   0x3   :  { %s21_s19 = sshll.u32 %s2320_s18, 4  ;;  %p2249_p0 = scmp.ne.s32.totalorder %s2597_s1, %s2248_s22  ;;  %s22_s19 = int_to_ptr.vmem [resolvable:$true] %s21_s19 }
   0x4   :  { %p2252_p1 = scmp.lt.u32.totalorder %s2248_s22, %s2597_s1 }
   0x6   :  { %p2254_p2 = pnand %p2252_p1, %p2249_p0 }
   0x8   :  { %2257 = shalt.err (!%p2254_p2)
}
   0x9   :  { %s2258_s27 = scalar_lea.vmem %s22_s19, 256  ;;  %p2263_p4 = scmp.lt.s32.totalorder %s22_s19, %s22_s19 }
   0xa   :  { %p2259_p3 = scmp.ne.s32.totalorder %s22_s19, %s2258_s27  ;;  %p2264_p5 = scmp.lt.s32.totalorder %s2258_s27, %s2258_s27 }
   0xc   :  { %p2265_p6 = por %p2264_p5, %p2263_p4 }
   0xe   :  { %p2266_p7 = pnand %p2265_p6, %p2259_p3 }
  0x10   :  { %2269 = shalt.err (!%p2266_p7)
}
  0x11   :  { %s2321_s28 = smov 128   ;;  %s2322_s29 = smov 8  }
  0x12   :  { %27 = dma.hbm_to_vmem [thread:$0]  %s2597_s1, 256, %s22_s19, [#allocation4], %s2321_s28, %s2321_s28, %s2322_s29  }
  0x13   :  { %s2323_s7 = smov [#allocation6]   ;;  %s2270_s11 = scalar_lea.hbm %s2599_s3, 4352 }
  0x14   :  { %s35_s8 = sshll.u32 %s2323_s7, 4  ;;  %p2271_p8 = scmp.ne.s32.totalorder %s2599_s3, %s2270_s11  ;;  %s36_s8 = int_to_ptr.vmem [resolvable:$true] %s35_s8 }
  0x15   :  { %p2274_p9 = scmp.lt.u32.totalorder %s2270_s11, %s2599_s3 }
  0x17   :  { %p2276_p10 = pnand %p2274_p9, %p2271_p8 }
  0x19   :  { %2279 = shalt.err (!%p2276_p10)
}
  0x1a   :  { %s2280_s16 = scalar_lea.vmem %s36_s8, 4352  ;;  %p2285_p12 = scmp.lt.s32.totalorder %s36_s8, %s36_s8 }
  0x1b   :  { %p2281_p11 = scmp.ne.s32.totalorder %s36_s8, %s2280_s16  ;;  %p2286_p13 = scmp.lt.s32.totalorder %s2280_s16, %s2280_s16 }
  0x1d   :  { %p2287_p0 = por %p2286_p13, %p2285_p12 }
  0x1f   :  { %p2288_p1 = pnand %p2287_p0, %p2281_p11 }
  0x21   :  { %2291 = shalt.err (!%p2288_p1)
}
  0x22   :  { %41 = dma.hbm_to_vmem [thread:$0]  %s2599_s3, 4352, %s36_s8, [#allocation7], %s2321_s28, %s2321_s28, %s2322_s29  }
  0x23   :  { %2314 = dma.done.wait [#allocation4], 256  }
  0x24   :  { %2315 = vsyncadd [#allocation4], 4294967040 }
  0x25   :  { %2316 = dma.done.wait [#allocation7], 4352  }
  0x26   :  { %2317 = vsyncadd [#allocation7], 4294962944  ;;  %vm103_vm0 = vcmask 130048   ;;  %v50_v0 = vld [vmem:[#allocation6] sm:$0xff]  ;;  %v51_v1 = vld [vmem:[#allocation6 + $0x8] sm:$0xff]  ;;  %vm191_vm1 = vcmask 261120  }
  0x27   :  { %v97_v2 = vld [vmem:[%s2598_s2] sm:$0xff]  ;;  %v2046_v3 = vpack.c.bf16 %v51_v1, %v50_v0  ;;  %v53_v5 = vld [vmem:[#allocation6 + $0x18] sm:$0xff]  ;;  %v54_v8 = vld [vmem:[#allocation6 + $0x20] sm:$0xff]  ;;  %vm362_vm2 = vcmask 64512   ;;  %s2324_s24 = smov 96   ;;  %s2325_s6 = smov 64  }
  0x28   :  { %1899 = vmatprep.mubr.msk.f32.mxu0 %vm103_vm0, %v97_v2  ;;  %v52_v4 = vld [vmem:[#allocation6 + $0x10] sm:$0xff]  ;;  %v98_v7 = vld [vmem:[%s2598_s2 + $0x8] sm:$0xff]  ;;  %v55_v9 = vld [vmem:[#allocation6 + $0x28] sm:$0xff]  ;;  %s2326_s7 = smov 88   ;;  %s2327_s8 = smov 120  }
  0x29   :  { %v2050_v6 = vpack.c.bf16 %v53_v5, %v52_v4  ;;  %2047 = vmatprep.subr.bf16.mxu0 %v2046_v3  ;;  %v2054_v10 = vpack.c.bf16 %v55_v9, %v54_v8  ;;  %v56_v11 = vld [vmem:[#allocation6 + $0x30] sm:$0xff]  ;;  %v57_v12 = vld [vmem:[#allocation6 + $0x38] sm:$0xff]  ;;  %v1762_v14 = vld [vmem:[%s2600_s4 + $0x10] ss:$0 sm:$0xff]  ;;  %s2328_s9 = smov 80   ;;  %s2329_s10 = smov 112  }
  0x2a   :  { %2049 = vmatpush3.bf16.msra.mxu0 %v2046_v3  ;;  %v2058_v13 = vpack.c.bf16 %v57_v12, %v56_v11  ;;  %v58_v21 = vld [vmem:[#allocation6 + $0x40] sm:$0xff]  ;;  %v59_v22 = vld [vmem:[#allocation6 + $0x48] sm:$0xff]  ;;  %v2412_v27 = vld [vmem:[#allocation3] sm:$0xff]  ;;  %s2330_s11 = smov 56   ;;  %s2331_s12 = smov 72  }
  0x2b   :  { %2051 = vmatprep.subr.bf16.mxu0 %v2050_v6  ;;  %v2062_v23 = vpack.c.bf16 %v59_v22, %v58_v21  ;;  %v1765_v24 = vld [vmem:[%s2600_s4 + $0x11] ss:$0 sm:$0xff]  ;;  %v2414_v29 = vld [vmem:[#allocation3 + $0x8] sm:$0xff]  ;;  %vm2439_vm3 = vmpackc.low %vm362_vm2, %vm362_vm2  ;;  %s2332_s13 = smov 104   ;;  %s2333_s14 = smov 48  }
  0x2c   :  { %v2452_v41 = vld [vmem:[%s2600_s4 + $0x8] sm:$0xff]  ;;  %v2457_v42 = vld [vmem:[%s2600_s4] sm:$0xff]  ;;  %s2334_s15 = smov 40  }
  0x2d   :  { %1900 = vmatmul.mubr.msk.f32.vlgmr.msra.gmra.mrb[0].mxu0 %vm103_vm0, %v98_v7 }
  0x2e   :  { %2053 = vmatpush3.bf16.msra.mxu0 %v2050_v6 }
  0x2f   :  { %2055 = vmatprep.subr.bf16.mxu0 %v2054_v10 }
  0x32   :  { %2057 = vmatpush3.bf16.msra.mxu0 %v2054_v10 }
  0x33   :  { %2059 = vmatprep.subr.bf16.mxu0 %v2058_v13 }
 0x100   :  { %v1901_v15 = vpop.f32.mrb[0].mxu0 }
 0x101   :  { %v182_v16 = vadd.f32 %v1901_v15, %v1762_v14  ;;  %v176_v17 = vpop.f32.mrb[1].mxu0 }
 0x102   :  { %v177_v18 = vadd.f32 %v1762_v14, %v176_v17 }
 0x103   :  { %v186_v20 = vmax.f32 %v182_v16, 0.0 }
 0x104   :  { %v185_v19 = vmax.f32 %v177_v18, 0.0 }
 0x106   :  { %1910 = vmatprep.mubr.msk.f32.mxu0 %vm191_vm1, %v185_v19 }
 0x107   :  { %1911 = vmatmul.mubr.msk.f32.vlgmr.msra.gmra.mrb[2].mxu0 %vm191_vm1, %v186_v20 }
 0x108   :  { %2061 = vmatpush3.bf16.msra.mxu0 %v2058_v13 }
 0x109   :  { %2063 = vmatprep.subr.bf16.mxu0 %v2062_v23 }
 0x10c   :  { %2065 = vmatpush3.bf16.msra.mxu0 %v2062_v23 }
 0x1da   :  { %v1912_v25 = vpop.f32.mrb[2].mxu0 }
 0x1db   :  { %v270_v26 = vadd.f32 %v1912_v25, %v1765_v24  ;;  %v264_v28 = vpop.f32.mrb[3].mxu0 }
 0x1dc   :  { %v265_v30 = vadd.f32 %v1765_v24, %v264_v28 }
 0x1dd   :  { %v2420_v32 = vadd.f32 %v270_v26, %v2414_v29 }
 0x1de   :  { %v2417_v31 = vadd.f32 %v265_v30, %v2412_v27 }
 0x1e0   :  { %1921 = vmatprep.mubr.msk.f32.mxu0 %vm191_vm1, %v2417_v31 }
 0x1e1   :  { %1922 = vmatmul.mubr.msk.f32.vlgmr.msra.gmra.mrb[4].mxu0 %vm191_vm1, %v2420_v32 }
 0x2b4   :  { %v2426_v33 = vpop.f32.mrb[4].mxu0 }
 0x2b5   :  { %v2428_v34 = vpop.f32.mrb[5].mxu0 }
 0x2b6   :  { %1928 = vmatprep.mubr.msk.f32.mxu0 %vm362_vm2, %v2428_v34  ;;  %v2434_v35 = vpack.i.bf16 %v2426_v33, %v2428_v34 }
 0x2b8   :  { %2169 = vrot.lane.b32.xlu0 %v2434_v35, %s2324_s24 }
 0x32a   :  { %v2170_v36 = vpop.permute.xlu0 %2169 }
 0x32b   :  { %v2172_v37 = vunpack.i.h.bf16 %v2170_v36  ;;  %v2171_v38 = vunpack.i.l.bf16 %v2170_v36 }
 0x32d   :  { %v2066_v40 = vpack.c.bf16 %v2172_v37, %v2171_v38 }
 0x32f   :  { %2068 = vmatprep.subr.msk.bf16.mxu0 %vm2439_vm3, %v2066_v40 }
 0x330   :  { %2071 = vmatpush3.bf16.xpose.msk.msra.mxu0 %vm2439_vm3, %v2066_v40 }
 0x337   :  { %1929 = vmatmul.mubr.msk.f32.vlgmr.msra.gmra.mrb[6].mxu0 %vm362_vm2, %v2426_v33 }
 0x40a   :  { %v1930_v43 = vpop.f32.mrb[6].mxu0 }
 0x40b   :  { %v443_v44 = vadd.f32 %v1930_v43, %v2452_v41  ;;  %v437_v45 = vpop.f32.mrb[7].mxu0 }
 0x40c   :  { %v438_v46 = vadd.f32 %v437_v45, %v2457_v42 }
 0x40d   :  { %v449_v47 = vsel %vm103_vm0, %v443_v44, -inf }
 0x40e   :  { %450 = vmax.xlane.f32.xlu1 %v449_v47  ;;  %v446_v48 = vsel %vm103_vm0, %v438_v46, -inf }
 0x40f   :  { %447 = vmax.xlane.f32.xlu0 %v446_v48 }
 0x41f   :  { %2174 = vrot.lane.b32.xlu1 %v2434_v35, %s2325_s6  ;;  %s2335_s6 = smov [#allocation8]  }
 0x423   :  { %2179 = vrot.lane.b32.xlu1 %v2434_v35, %s2326_s7  ;;  %s1749_s7 = sshll.u32 %s2335_s6, 4  ;;  %s1750_s7 = int_to_ptr.vmem [resolvable:$true] %s1749_s7 }
 0x424   :  { %p2297_p3 = scmp.lt.s32.totalorder %s1750_s7, %s1750_s7 }
 0x425   :  { %557 = vrot.lane.b32.xlu0 %v2426_v33, %s2327_s8 }
 0x49b   :  { %v451_v49 = vpop.xlane.xlu1 %450 }
 0x49c   :  { %v453_v50 = vsub.f32 %v443_v44, %v451_v49  ;;  %v448_v51 = vpop.xlane.xlu0 %447 }
 0x49d   :  { %v452_v52 = vsub.f32 %v438_v46, %v448_v51 }
 0x49e   :  { %v456_v53 = vmul.f32 1.442695, %v453_v50 }
 0x49f   :  { %v454_v54 = vmul.f32 1.442695, %v452_v52  ;;  %v2175_v55 = vpop.permute.xlu1 %2174 }
 0x4a0   :  { %2208 = vpow2.f32 %v456_v53  ;;  %v2177_v56 = vunpack.i.h.bf16 %v2175_v55  ;;  %v2176_v57 = vunpack.i.l.bf16 %v2175_v55  ;;  %v558_v14 = vpop.permute.xlu0 %557 }
 0x4a1   :  { %2210 = vpow2.f32 %v454_v54 }
 0x4a2   :  { %v2072_v58 = vpack.c.bf16 %v2177_v56, %v2176_v57 }
 0x4a3   :  { %v2180_v59 = vpop.permute.xlu1 %2179 }
 0x4a4   :  { %v2182_v60 = vunpack.i.h.bf16 %v2180_v59  ;;  %v2181_v61 = vunpack.i.l.bf16 %v2180_v59  ;;  %2073 = vmatprep.subr.bf16.mxu0 %v2072_v58 }
 0x4a5   :  { %2075 = vmatpush3.bf16.msra.mxu0 %v2072_v58 }
 0x4a6   :  { %v2076_v62 = vpack.c.bf16 %v2182_v60, %v2181_v61 }
 0x4a8   :  { %2078 = vmatprep.subr.msk.bf16.mxu0 %vm2439_vm3, %v2076_v62 }
 0x4aa   :  { %v2209_v63 = vpop.eup %2208 }
 0x4ab   :  { %v461_v0 = vsel %vm103_vm0, %v2209_v63, 0.0  ;;  %v2211_v1 = vpop.eup %2210 }
 0x4ac   :  { %462 = vadd.xlane.f32.xlu1 %v461_v0  ;;  %v458_v2 = vsel %vm103_vm0, %v2211_v1, 0.0 }
 0x4b0   :  { %459 = vadd.xlane.f32.xlu1 %v458_v2 }
 0x4c1   :  { %555 = vrot.lane.b32.xlu1 %v2428_v34, %s2327_s8 }
 0x4c5   :  { %2184 = vrot.lane.b32.xlu1 %v2434_v35, %s2328_s9 }
 0x4c9   :  { %917 = vrot.lane.b32.xlu1 %v2428_v34, %s2329_s10 }
 0x4cd   :  { %919 = vrot.lane.b32.xlu1 %v2426_v33, %s2329_s10 }
 0x539   :  { %v463_v3 = vpop.xlane.xlu1 %462 }
 0x53a   :  { %2212 = vrcp.f32 %v463_v3 }
 0x53d   :  { %v460_v4 = vpop.xlane.xlu1 %459 }
 0x53e   :  { %2214 = vrcp.f32 %v460_v4 }
 0x541   :  { %v556_v5 = vpop.permute.xlu1 %555 }
 0x544   :  { %v2213_v7 = vpop.eup %2212 }
 0x545   :  { %v2185_v6 = vpop.permute.xlu1 %2184  ;;  %v467_v12 = vmul.f32 %v2213_v7, %v2209_v63 }
 0x546   :  { %v2187_v9 = vunpack.i.h.bf16 %v2185_v6  ;;  %v2186_v10 = vunpack.i.l.bf16 %v2185_v6 }
 0x548   :  { %v2215_v8 = vpop.eup %2214  ;;  %v2086_v13 = vpack.c.bf16 %v2187_v9, %v2186_v10  ;;  %v61_v9 = vld [vmem:[#allocation6 + $0x58] sm:$0xff]  ;;  %v60_v10 = vld [vmem:[#allocation6 + $0x50] sm:$0xff] }
 0x549   :  { %v465_v11 = vmul.f32 %v2215_v8, %v2211_v1  ;;  %v918_v15 = vpop.permute.xlu1 %917 }
 0x54b   :  { %1935 = vmatprep.mubr.msk.f32.mxu0 %vm103_vm0, %v465_v11 }
 0x54c   :  { %1936 = vmatmul.mubr.msk.f32.vlgmr.msra.gmra.mrb[8].mxu0 %vm103_vm0, %v467_v12 }
 0x54d   :  { %2081 = vmatpush3.bf16.xpose.msk.msra.mxu0 %vm2439_vm3, %v2076_v62  ;;  %1942 = vmatprep.mubr.msk.f32.mxu0 %vm362_vm2, %v556_v5  ;;  %v920_v16 = vpop.permute.xlu1 %919 }
 0x54e   :  { %2088 = vmatprep.subr.msk.bf16.mxu0 %vm2439_vm3, %v2086_v13 }
 0x554   :  { %1943 = vmatmul.mubr.msk.f32.vlgmr.msra.gmra.mrb[10].mxu0 %vm362_vm2, %v558_v14 }
 0x555   :  { %2091 = vmatpush3.bf16.xpose.msk.msra.mxu0 %vm2439_vm3, %v2086_v13  ;;  %1966 = vmatprep.mubr.msk.f32.mxu0 %vm362_vm2, %v918_v15 }
 0x55c   :  { %1967 = vmatmul.mubr.msk.f32.vlgmr.msra.gmra.mrb[12].mxu0 %vm362_vm2, %v920_v16 }
 0x61f   :  { %v2486_v17 = vpop.f32.mrb[8].mxu0 }
 0x620   :  { %v2488_v18 = vpop.f32.mrb[9].mxu0 }
 0x627   :  { %v1944_v19 = vpop.f32.mrb[10].mxu0 }
 0x628   :  { %v643_v20 = vadd.f32 %v1944_v19, %v2452_v41  ;;  %v637_v21 = vpop.f32.mrb[11].mxu0 }
 0x629   :  { %v638_v22 = vadd.f32 %v637_v21, %v2457_v42 }
 0x62a   :  { %v649_v23 = vsel %vm103_vm0, %v643_v20, -inf }
 0x62b   :  { %650 = vmax.xlane.f32.xlu0 %v649_v23  ;;  %v646_v24 = vsel %vm103_vm0, %v638_v22, -inf }
 0x62c   :  { %647 = vmax.xlane.f32.xlu1 %v646_v24 }
 0x62f   :  { %v1968_v25 = vpop.f32.mrb[12].mxu0 }
 0x630   :  { %v999_v26 = vpop.f32.mrb[13].mxu0  ;;  %v1005_v49 = vadd.f32 %v1968_v25, %v2452_v41 }
 0x631   :  { %v1000_v47 = vadd.f32 %v999_v26, %v2457_v42 }
 0x632   :  { %v1011_v50 = vsel %vm103_vm0, %v1005_v49, -inf }
 0x633   :  { %v1008_v48 = vsel %vm103_vm0, %v1000_v47, -inf }
 0x6b8   :  { %v651_v28 = vpop.xlane.xlu0 %650 }
 0x6b9   :  { %v653_v30 = vsub.f32 %v643_v20, %v651_v28  ;;  %v648_v36 = vpop.xlane.xlu1 %647 }
 0x6ba   :  { %v652_v37 = vsub.f32 %v638_v22, %v648_v36 }
 0x6bb   :  { %v656_v38 = vmul.f32 1.442695, %v653_v30 }
 0x6bc   :  { %v654_v40 = vmul.f32 1.442695, %v652_v37 }
 0x6bd   :  { %2216 = vpow2.f32 %v656_v38 }
 0x6be   :  { %2218 = vpow2.f32 %v654_v40 }
 0x6c7   :  { %v2217_v43 = vpop.eup %2216 }
 0x6c8   :  { %v2219_v44 = vpop.eup %2218  ;;  %v661_v45 = vsel %vm103_vm0, %v2217_v43, 0.0 }
 0x6c9   :  { %662 = vadd.xlane.f32.xlu0 %v661_v45  ;;  %v658_v46 = vsel %vm103_vm0, %v2219_v44, 0.0 }
 0x6ca   :  { %659 = vadd.xlane.f32.xlu1 %v658_v46 }
 0x6db   :  { %2189 = vrot.lane.b32.xlu1 %v2434_v35, %s2330_s11 }
 0x6df   :  { %2194 = vrot.lane.b32.xlu0 %v2434_v35, %s2331_s12  ;;  %1200 = vrot.lane.b32.xlu1 %v2428_v34, %s2332_s13 }
 0x6e3   :  { %1202 = vrot.lane.b32.xlu1 %v2426_v33, %s2332_s13 }
 0x6fe   :  { %1009 = vmax.xlane.f32.xlu0 %v1008_v48 }
 0x707   :  { %1012 = vmax.xlane.f32.xlu1 %v1011_v50 }
 0x718   :  { %2199 = vrot.lane.b32.xlu1 %v2434_v35, %s2333_s14 }
 0x71c   :  { %2204 = vrot.lane.b32.xlu1 %v2434_v35, %s2334_s15 }
 0x756   :  { %v663_v51 = vpop.xlane.xlu0 %662 }
 0x757   :  { %2220 = vrcp.f32 %v663_v51  ;;  %v660_v34 = vpop.xlane.xlu1 %659 }
 0x758   :  { %2222 = vrcp.f32 %v660_v34 }
 0x75a   :  { %v2195_v33 = vpop.permute.xlu0 %2194 }
 0x75b   :  { %v2197_v52 = vunpack.i.h.bf16 %v2195_v33  ;;  %v2196_v53 = vunpack.i.l.bf16 %v2195_v33  ;;  %v2190_v54 = vpop.permute.xlu1 %2189 }
 0x75c   :  { %v2192_v55 = vunpack.i.h.bf16 %v2190_v54  ;;  %v2191_v56 = vunpack.i.l.bf16 %v2190_v54 }
 0x75d   :  { %v2096_v57 = vpack.c.bf16 %v2197_v52, %v2196_v53  ;;  %v63_v52 = vld [vmem:[#allocation6 + $0x68] sm:$0xff] }
 0x75e   :  { %v2082_v58 = vpack.c.bf16 %v2192_v55, %v2191_v56 }
 0x75f   :  { %2098 = vmatprep.subr.msk.bf16.mxu0 %vm2439_vm3, %v2096_v57  ;;  %v1201_v59 = vpop.permute.xlu1 %1200 }
 0x760   :  { %2083 = vmatprep.subr.bf16.mxu1 %v2082_v58  ;;  %2101 = vmatpush3.bf16.xpose.msk.msra.mxu0 %vm2439_vm3, %v2096_v57 }
 0x761   :  { %v2221_v35 = vpop.eup %2220  ;;  %1985 = vmatprep.mubr.msk.f32.mxu0 %vm362_vm2, %v1201_v59  ;;  %2085 = vmatpush3.bf16.msra.mxu1 %v2082_v58 }
 0x762   :  { %v2223_v60 = vpop.eup %2222  ;;  %v667_v62 = vmul.f32 %v2221_v35, %v2217_v43  ;;  %1952 = vmatprep.subr.mxu1 %v61_v9 }
 0x763   :  { %v665_v61 = vmul.f32 %v2223_v60, %v2219_v44  ;;  %v1203_v63 = vpop.permute.xlu1 %1202  ;;  %v1802_v60 = vld [vmem:[%s2600_s4 + $0x12] ss:$0 sm:$0xff] }
 0x765   :  { %1949 = vmatprep.mubr.msk.f32.mxu1 %vm103_vm0, %v665_v61 }
 0x766   :  { %1950 = vmatmul.mubr.msk.f32.vlgmr.msra.gmra.mrb[0].mxu1 %vm103_vm0, %v667_v62 }
 0x767   :  { %1986 = vmatmul.mubr.msk.f32.vlgmr.msra.gmra.mrb[14].mxu0 %vm362_vm2, %v1203_v63  ;;  %1953 = vmatpush3.msra.mxu1 %v61_v9 }
 0x768   :  { %1957 = vmatprep.subr.mxu1 %v60_v10 }
 0x78b   :  { %v1010_v0 = vpop.xlane.xlu0 %1009 }
 0x78c   :  { %v1014_v1 = vsub.f32 %v1000_v47, %v1010_v0 }
 0x78e   :  { %v1016_v2 = vmul.f32 1.442695, %v1014_v1 }
 0x790   :  { %2224 = vpow2.f32 %v1016_v2 }
 0x794   :  { %v1013_v39 = vpop.xlane.xlu1 %1012 }
 0x795   :  { %v1015_v3 = vsub.f32 %v1005_v49, %v1013_v39 }
 0x797   :  { %v1018_v4 = vmul.f32 1.442695, %v1015_v3 }
 0x798   :  { %v2200_v12 = vpop.permute.xlu1 %2199 }
 0x799   :  { %2226 = vpow2.f32 %v1018_v4  ;;  %v2202_v14 = vunpack.i.h.bf16 %v2200_v12  ;;  %v2201_v15 = vunpack.i.l.bf16 %v2200_v12  ;;  %v64_v12 = vld [vmem:[#allocation6 + $0x70] sm:$0xff] }
 0x79a   :  { %v2225_v5 = vpop.eup %2224 }
 0x79b   :  { %v1020_v6 = vsel %vm103_vm0, %v2225_v5, 0.0  ;;  %v2092_v22 = vpack.c.bf16 %v2202_v14, %v2201_v15  ;;  %v66_v15 = vld [vmem:[#allocation6 + $0x80] sm:$0xff] }
 0x79c   :  { %1021 = vadd.xlane.f32.xlu0 %v1020_v6  ;;  %v2205_v28 = vpop.permute.xlu1 %2204 }
 0x79d   :  { %v2207_v38 = vunpack.i.h.bf16 %v2205_v28  ;;  %v2206_v40 = vunpack.i.l.bf16 %v2205_v28  ;;  %v73_v28 = vld [vmem:[#allocation6 + $0xb8] sm:$0xff] }
 0x7a3   :  { %v2227_v7 = vpop.eup %2226 }
 0x7a4   :  { %v1023_v8 = vsel %vm103_vm0, %v2227_v7, 0.0 }
 0x7a5   :  { %1024 = vadd.xlane.f32.xlu0 %v1023_v8 }
 0x829   :  { %v1022_v11 = vpop.xlane.xlu0 %1021 }
 0x82a   :  { %2228 = vrcp.f32 %v1022_v11 }
 0x832   :  { %v1025_v13 = vpop.xlane.xlu0 %1024 }
 0x833   :  { %2230 = vrcp.f32 %v1025_v13  ;;  %v65_v13 = vld [vmem:[#allocation6 + $0x78] sm:$0xff] }
 0x834   :  { %v2229_v26 = vpop.eup %2228  ;;  %v2106_v14 = vpack.c.bf16 %v65_v13, %v64_v12 }
 0x835   :  { %v1027_v37 = vmul.f32 %v2229_v26, %v2225_v5  ;;  %v72_v26 = vld [vmem:[#allocation6 + $0xb0] sm:$0xff] }
 0x836   :  { %2107 = vmatprep.subr.bf16.mxu0 %v2106_v14 }
 0x837   :  { %2109 = vmatpush3.bf16.msra.mxu0 %v2106_v14 }
 0x839   :  { %v1951_v16 = vpop.f32.mrb[0].mxu1 }
 0x83a   :  { %v746_v19 = vpop.f32.mrb[1].mxu1  ;;  %v1987_v20 = vpop.f32.mrb[14].mxu0 }
 0x83b   :  { %1954 = vmatprep.mubr.msk.f32.mxu1 %vm362_vm2, %v746_v19  ;;  %v1282_v21 = vpop.f32.mrb[15].mxu0  ;;  %v1288_v24 = vadd.f32 %v1987_v20, %v2452_v41  ;;  %v68_v20 = vld [vmem:[#allocation6 + $0x90] sm:$0xff] }
 0x83c   :  { %v1283_v23 = vadd.f32 %v1282_v21, %v2457_v42  ;;  %1955 = vmatmul.mubr.msk.f32.vlgmr.msra.gmra.mrb[2].mxu1 %vm362_vm2, %v1951_v16  ;;  %v62_v42 = vld [vmem:[#allocation6 + $0x60] sm:$0xff]  ;;  %v67_v16 = vld [vmem:[#allocation6 + $0x88] sm:$0xff]  ;;  %v69_v21 = vld [vmem:[#allocation6 + $0x98] sm:$0xff] }
 0x83d   :  { %1958 = vmatpush3.msra.mxu1 %v60_v10  ;;  %1959 = vmatprep.mubr.msk.f32.mxu1 %vm362_vm2, %v2488_v18  ;;  %v1294_v30 = vsel %vm103_vm0, %v1288_v24, -inf  ;;  %v2231_v36 = vpop.eup %2230  ;;  %v2102_v18 = vpack.c.bf16 %v2207_v38, %v2206_v40  ;;  %v2110_v19 = vpack.c.bf16 %v67_v16, %v66_v15  ;;  %v76_v38 = vld [vmem:[#allocation6 + $0xd0] sm:$0xff]  ;;  %v77_v40 = vld [vmem:[#allocation6 + $0xd8] sm:$0xff] }
 0x83e   :  { %2093 = vmatprep.subr.bf16.mxu1 %v2092_v22  ;;  %v1291_v25 = vsel %vm103_vm0, %v1283_v23, -inf  ;;  %v1029_v41 = vmul.f32 %v2231_v36, %v2227_v7  ;;  %v74_v36 = vld [vmem:[#allocation6 + $0xc0] sm:$0xff] }
 0x83f   :  { %1292 = vmax.xlane.f32.xlu0 %v1291_v25  ;;  %2111 = vmatprep.subr.bf16.mxu0 %v2110_v19 }
 0x840   :  { %2113 = vmatpush3.bf16.msra.mxu0 %v2110_v19 }
 0x843   :  { %1295 = vmax.xlane.f32.xlu0 %v1294_v30  ;;  %v2122_v30 = vpack.c.bf16 %v73_v28, %v72_v26 }
 0x844   :  { %1960 = vmatmul.mubr.msk.f32.vlgmr.msra.gmra.mrb[2].mxu1 %vm362_vm2, %v2486_v17 }
 0x845   :  { %2095 = vmatpush3.bf16.msra.mxu1 %v2092_v22  ;;  %1973 = vmatprep.mubr.msk.f32.mxu1 %vm103_vm0, %v1027_v37  ;;  %v70_v22 = vld [vmem:[#allocation6 + $0xa0] sm:$0xff]  ;;  %v75_v37 = vld [vmem:[#allocation6 + $0xc8] sm:$0xff] }
 0x846   :  { %1976 = vmatprep.subr.mxu1 %v62_v42 }
 0x848   :  { %1974 = vmatmul.mubr.msk.f32.vlgmr.msra.gmra.mrb[4].mxu1 %vm103_vm0, %v1029_v41  ;;  %v2130_v41 = vpack.c.bf16 %v77_v40, %v76_v38  ;;  %v1810_v40 = vld [vmem:[%s2600_s4 + $0x16] ss:$0 sm:$0xff] }
 0x849   :  { %1977 = vmatpush3.msra.mxu1 %v62_v42  ;;  %v2126_v42 = vpack.c.bf16 %v75_v37, %v74_v36 }
 0x84a   :  { %2103 = vmatprep.subr.bf16.mxu1 %v2102_v18 }
 0x8cc   :  { %v1293_v43 = vpop.xlane.xlu0 %1292 }
 0x8cd   :  { %v1297_v44 = vsub.f32 %v1283_v23, %v1293_v43  ;;  %v2114_v23 = vpack.c.bf16 %v69_v21, %v68_v20  ;;  %v79_v43 = vld [vmem:[#allocation6 + $0xe8] sm:$0xff] }
 0x8cf   :  { %v1299_v45 = vmul.f32 1.442695, %v1297_v44 }
 0x8d0   :  { %v1296_v46 = vpop.xlane.xlu0 %1295 }
 0x8d1   :  { %2232 = vpow2.f32 %v1299_v45  ;;  %v1298_v47 = vsub.f32 %v1288_v24, %v1296_v46  ;;  %v71_v24 = vld [vmem:[#allocation6 + $0xa8] sm:$0xff]  ;;  %v80_v45 = vld [vmem:[#allocation6 + $0xf0] sm:$0xff]  ;;  %v81_v46 = vld [vmem:[#allocation6 + $0xf8] sm:$0xff] }
 0x8d2   :  { %v2118_v25 = vpack.c.bf16 %v71_v24, %v70_v22 }
 0x8d3   :  { %v1301_v48 = vmul.f32 1.442695, %v1298_v47  ;;  %v2138_v47 = vpack.c.bf16 %v81_v46, %v80_v45 }
 0x8d5   :  { %2234 = vpow2.f32 %v1301_v48 }
 0x8db   :  { %v2233_v49 = vpop.eup %2232 }
 0x8dc   :  { %v1303_v17 = vsel %vm103_vm0, %v2233_v49, 0.0 }
 0x8dd   :  { %1304 = vadd.xlane.f32.xlu0 %v1303_v17 }
 0x8df   :  { %v2235_v50 = vpop.eup %2234 }
 0x8e0   :  { %v1306_v51 = vsel %vm103_vm0, %v2235_v50, 0.0 }
 0x8e1   :  { %1307 = vadd.xlane.f32.xlu0 %v1306_v51 }
 0x91b   :  { %v1975_v34 = vpop.f32.mrb[4].mxu1 }
 0x91c   :  { %v1108_v33 = vpop.f32.mrb[5].mxu1 }
 0x91d   :  { %1978 = vmatprep.mubr.msk.f32.mxu1 %vm362_vm2, %v1108_v33 }
 0x91e   :  { %1979 = vmatmul.mubr.msk.f32.vlgmr.msra.gmra.mrb[2].mxu1 %vm362_vm2, %v1975_v34 }
 0x91f   :  { %2105 = vmatpush3.bf16.msra.mxu1 %v2102_v18  ;;  %v78_v18 = vld [vmem:[#allocation6 + $0xe0] sm:$0xff] }
 0x920   :  { %1995 = vmatprep.subr.mxu1 %v63_v52  ;;  %v2134_v44 = vpack.c.bf16 %v79_v43, %v78_v18  ;;  %v1737_v43 = vstv %s2596_s0 }
 0x96a   :  { %v1305_v53 = vpop.xlane.xlu0 %1304 }
 0x96b   :  { %2236 = vrcp.f32 %v1305_v53 }
 0x96e   :  { %v1308_v54 = vpop.xlane.xlu0 %1307 }
 0x96f   :  { %2238 = vrcp.f32 %v1308_v54  ;;  %v1804_v54 = vld [vmem:[%s2600_s4 + $0x14] ss:$0 sm:$0xff] }
 0x975   :  { %v2237_v55 = vpop.eup %2236 }
 0x976   :  { %v1310_v56 = vmul.f32 %v2237_v55, %v2233_v49 }
 0x978   :  { %1992 = vmatprep.mubr.msk.f32.mxu1 %vm103_vm0, %v1310_v56 }
 0x979   :  { %v2239_v57 = vpop.eup %2238 }
 0x97a   :  { %v1312_v58 = vmul.f32 %v2239_v57, %v2235_v50 }
 0x97c   :  { %1993 = vmatmul.mubr.msk.f32.vlgmr.msra.gmra.mrb[6].mxu1 %vm103_vm0, %v1312_v58 }
 0x97d   :  { %1996 = vmatpush3.msra.mxu1 %v63_v52  ;;  %v1803_v52 = vld [vmem:[%s2600_s4 + $0x13] ss:$0 sm:$0xff] }
 0x97e   :  { %2115 = vmatprep.subr.bf16.mxu1 %v2114_v23 }
 0xa4f   :  { %v1994_v59 = vpop.f32.mrb[6].mxu1 }
 0xa50   :  { %v1391_v35 = vpop.f32.mrb[7].mxu1 }
 0xa51   :  { %1997 = vmatprep.mubr.msk.f32.mxu1 %vm362_vm2, %v1391_v35 }
 0xa52   :  { %1998 = vmatmul.mubr.msk.f32.vlgmr.msra.gmra.mrb[2].mxu1 %vm362_vm2, %v1994_v59 }
 0xa53   :  { %2117 = vmatpush3.bf16.msra.mxu1 %v2114_v23 }
 0xa54   :  { %2119 = vmatprep.subr.bf16.mxu1 %v2118_v25 }
 0xa57   :  { %2121 = vmatpush3.bf16.msra.mxu1 %v2118_v25 }
 0xa58   :  { %2123 = vmatprep.subr.bf16.mxu1 %v2122_v30 }
 0xa5b   :  { %2125 = vmatpush3.bf16.msra.mxu1 %v2122_v30 }
 0xa5c   :  { %2127 = vmatprep.subr.bf16.mxu1 %v2126_v42 }
 0xa5f   :  { %2129 = vmatpush3.bf16.msra.mxu1 %v2126_v42  ;;  %v1809_v42 = vld [vmem:[%s2600_s4 + $0x15] ss:$0 sm:$0xff] }
 0xa60   :  { %2131 = vmatprep.subr.bf16.mxu1 %v2130_v41 }
 0xa63   :  { %2133 = vmatpush3.bf16.msra.mxu1 %v2130_v41 }
 0xa64   :  { %2135 = vmatprep.subr.bf16.mxu1 %v2134_v44 }
 0xa67   :  { %2137 = vmatpush3.bf16.msra.mxu1 %v2134_v44 }
 0xa68   :  { %2139 = vmatprep.subr.bf16.mxu1 %v2138_v47 }
 0xa6b   :  { %2141 = vmatpush3.bf16.msra.mxu1 %v2138_v47 }
 0xb25   :  { %v1999_v61 = vpop.f32.mrb[2].mxu1 }
 0xb26   :  { %v1488_v62 = vadd.f32 %v1999_v61, %v1802_v60  ;;  %v1472_v63 = vpop.f32.mrb[3].mxu1  ;;  %v83_v61 = vld [vmem:[#allocation6 + $0x108] sm:$0xff] }
 0xb27   :  { %v1487_v0 = vadd.f32 %v1802_v60, %v1472_v63  ;;  %v82_v60 = vld [vmem:[#allocation6 + $0x100] sm:$0xff] }
 0xb28   :  { %v1490_v1 = vadd.f32 %v1488_v62, %v2420_v32  ;;  %v2142_v62 = vpack.c.bf16 %v83_v61, %v82_v60  ;;  %v1805_v63 = vld [vmem:[%s2600_s4 + $0x17] ss:$0 sm:$0xff] }
 0xb29   :  { %v1489_v2 = vadd.f32 %v1487_v0, %v2417_v31 }
 0xb2a   :  { %v1494_v39 = vsel %vm191_vm1, %v1490_v1, 0.0  ;;  %2143 = vmatprep.subr.bf16.mxu1 %v2142_v62 }
 0xb2b   :  { %1495 = vadd.xlane.f32.xlu1 %v1494_v39  ;;  %v1491_v3 = vsel %vm191_vm1, %v1489_v2, 0.0  ;;  %2145 = vmatpush3.bf16.msra.mxu1 %v2142_v62 }
 0xb2c   :  { %1492 = vadd.xlane.f32.xlu0 %v1491_v3 }
 0xbb8   :  { %v1496_v4 = vpop.xlane.xlu1 %1495 }
 0xbb9   :  { %v1499_v5 = vmul.f32 0.03125, %v1496_v4  ;;  %v1493_v6 = vpop.xlane.xlu0 %1492 }
 0xbba   :  { %v1498_v7 = vmul.f32 0.03125, %v1493_v6 }
 0xbbb   :  { %v2543_v8 = vsub.f32 %v1490_v1, %v1499_v5  ;;  %v1808_v5 = vld [vmem:[%s2600_s4 + $0x18] ss:$0 sm:$0xff]  ;;  %s2292_s4 = scalar_lea.vmem %s1750_s7, 256 }
 0xbbc   :  { %v1500_v9 = vsub.f32 %v1489_v2, %v1498_v7  ;;  %p2293_p2 = scmp.ne.s32.totalorder %s1750_s7, %s2292_s4  ;;  %p2298_p4 = scmp.lt.s32.totalorder %s2292_s4, %s2292_s4 }
 0xbbd   :  { %v1503_v32 = vmul.f32 %v2543_v8, %v2543_v8 }
 0xbbe   :  { %v1502_v10 = vmul.f32 %v1500_v9, %v1500_v9  ;;  %p2299_p5 = por %p2298_p4, %p2297_p3 }
 0xbbf   :  { %v1507_v31 = vsel %vm191_vm1, %v1503_v32, 0.0 }
 0xbc0   :  { %v1504_v11 = vsel %vm191_vm1, %v1502_v10, 0.0  ;;  %p2300_p6 = pnand %p2299_p5, %p2293_p2 }
 0xbc1   :  { %1505 = vadd.xlane.f32.xlu0 %v1504_v11 }
 0xbc5   :  { %1508 = vadd.xlane.f32.xlu0 %v1507_v31 }
 0xc4e   :  { %v1506_v48 = vpop.xlane.xlu0 %1505 }
 0xc4f   :  { %v1510_v49 = vmul.f32 0.03125, %v1506_v48 }
 0xc51   :  { %v1512_v17 = vadd.f32 1e-05, %v1510_v49 }
 0xc52   :  { %v1509_v50 = vpop.xlane.xlu0 %1508 }
 0xc53   :  { %2240 = vrsqrt.f32 %v1512_v17  ;;  %v1511_v51 = vmul.f32 0.03125, %v1509_v50 }
 0xc55   :  { %v1513_v34 = vadd.f32 1e-05, %v1511_v51 }
 0xc57   :  { %2242 = vrsqrt.f32 %v1513_v34 }
 0xc5d   :  { %v2241_v33 = vpop.eup %2240 }
 0xc5e   :  { %v1516_v53 = vmul.f32 %v2241_v33, %v1500_v9 }
 0xc60   :  { %v1522_v55 = vmul.f32 %v1803_v52, %v1516_v53 }
 0xc61   :  { %v2243_v56 = vpop.eup %2242 }
 0xc62   :  { %v1517_v57 = vmul.f32 %v2243_v56, %v2543_v8  ;;  %v1528_v58 = vadd.f32 %v1804_v54, %v1522_v55 }
 0xc64   :  { %v1523_v59 = vmul.f32 %v1803_v52, %v1517_v57  ;;  %2008 = vmatprep.mubr.msk.f32.mxu0 %vm191_vm1, %v1528_v58 }
 0xc66   :  { %v1529_v35 = vadd.f32 %v1804_v54, %v1523_v59 }
 0xc68   :  { %2009 = vmatmul.mubr.msk.f32.vlgmr.msra.gmra.mrb[16].mxu0 %vm191_vm1, %v1529_v35 }
 0xd3b   :  { %v2010_v0 = vpop.f32.mrb[16].mxu0 }
 0xd3c   :  { %v1612_v1 = vadd.f32 %v2010_v0, %v1805_v63  ;;  %v1606_v2 = vpop.f32.mrb[17].mxu0 }
 0xd3d   :  { %v1607_v39 = vadd.f32 %v1805_v63, %v1606_v2 }
 0xd3e   :  { %v1616_v4 = vmax.f32 %v1612_v1, 0.0 }
 0xd3f   :  { %v1615_v3 = vmax.f32 %v1607_v39, 0.0 }
 0xd41   :  { %2043 = vmatprep.mubr.f32.mxu1 %v1615_v3 }
 0xd42   :  { %2044 = vmatmul.mubr.f32.vlgmr.msra.gmra.mrb[8].mxu1 %v1616_v4 }
 0xe15   :  { %v2045_v6 = vpop.f32.mrb[8].mxu1 }
 0xe16   :  { %v1687_v7 = vpop.f32.mrb[9].mxu1  ;;  %v1693_v8 = vadd.f32 %v2045_v6, %v1808_v5 }
 0xe17   :  { %v1688_v9 = vadd.f32 %v1808_v5, %v1687_v7 }
 0xe18   :  { %v1697_v32 = vadd.f32 %v1693_v8, %v1529_v35 }
 0xe19   :  { %v1696_v10 = vadd.f32 %v1688_v9, %v1528_v58 }
 0xe1a   :  { %v1701_v31 = vsel %vm191_vm1, %v1697_v32, 0.0 }
 0xe1b   :  { %v1698_v11 = vsel %vm191_vm1, %v1696_v10, 0.0 }
 0xe1c   :  { %1699 = vadd.xlane.f32.xlu0 %v1698_v11 }
 0xe20   :  { %1702 = vadd.xlane.f32.xlu0 %v1701_v31 }
 0xea9   :  { %v1700_v12 = vpop.xlane.xlu0 %1699 }
 0xeaa   :  { %v1704_v13 = vmul.f32 0.03125, %v1700_v12 }
 0xeac   :  { %v1706_v14 = vsub.f32 %v1696_v10, %v1704_v13 }
 0xead   :  { %v1703_v15 = vpop.xlane.xlu0 %1702 }
 0xeae   :  { %v1705_v16 = vmul.f32 0.03125, %v1703_v15  ;;  %v1708_v19 = vmul.f32 %v1706_v14, %v1706_v14 }
 0xeb0   :  { %v1707_v20 = vsub.f32 %v1697_v32, %v1705_v16  ;;  %v1710_v21 = vsel %vm191_vm1, %v1708_v19, 0.0 }
 0xeb1   :  { %1711 = vadd.xlane.f32.xlu0 %v1710_v21 }
 0xeb2   :  { %v1709_v22 = vmul.f32 %v1707_v20, %v1707_v20 }
 0xeb4   :  { %v1713_v23 = vsel %vm191_vm1, %v1709_v22, 0.0 }
 0xeb5   :  { %1714 = vadd.xlane.f32.xlu0 %v1713_v23 }
 0xf3e   :  { %v1712_v24 = vpop.xlane.xlu0 %1711 }
 0xf3f   :  { %v1716_v25 = vmul.f32 0.03125, %v1712_v24 }
 0xf41   :  { %v1718_v26 = vadd.f32 1e-05, %v1716_v25 }
 0xf42   :  { %v1715_v28 = vpop.xlane.xlu0 %1714 }
 0xf43   :  { %2244 = vrsqrt.f32 %v1718_v26  ;;  %v1717_v30 = vmul.f32 0.03125, %v1715_v28 }
 0xf45   :  { %v1719_v36 = vadd.f32 1e-05, %v1717_v30 }
 0xf47   :  { %2246 = vrsqrt.f32 %v1719_v36 }
 0xf4d   :  { %v2245_v37 = vpop.eup %2244 }
 0xf4e   :  { %v1722_v38 = vmul.f32 %v2245_v37, %v1706_v14 }
 0xf50   :  { %v1728_v41 = vmul.f32 %v1809_v42, %v1722_v38 }
 0xf51   :  { %v2247_v18 = vpop.eup %2246 }
 0xf52   :  { %v1723_v44 = vmul.f32 %v2247_v18, %v1707_v20  ;;  %v1734_v45 = vadd.f32 %v1810_v40, %v1728_v41 }
 0xf54   :  { %v1729_v46 = vmul.f32 %v1809_v42, %v1723_v44  ;;  %v1738_v47 = vmul.f32 %v1737_v43, %v1734_v45 }
 0xf56   :  { %v1735_v48 = vadd.f32 %v1810_v40, %v1729_v46  ;;  %v1740_v49 = vadd.f32 %v1738_v47, %v2412_v27 }
 0xf58   :  { %v1739_v17 = vmul.f32 %v1737_v43, %v1735_v48  ;;  %1742 = vst.msk [vmem:[#allocation8] sm:$0xff] %vm191_vm1, %v1740_v49 }
 0xf5a   :  { %v1741_v50 = vadd.f32 %v1739_v17, %v2414_v29 }
 0xf5c   :  { %1743 = vst.msk [vmem:[#allocation8 + $0x8] sm:$0xff] %vm191_vm1, %v1741_v50 }
 0xf5d   :  { %2303 = shalt.err (!%p2300_p6)
}
 0xf5e   :  { %s2304_s9 = scalar_lea.hbm %s2601_s5, 256 }
 0xf5f   :  { %p2305_p7 = scmp.ne.s32.totalorder %s2601_s5, %s2304_s9  ;;  %p2308_p8 = scmp.lt.u32.totalorder %s2304_s9, %s2601_s5 }
 0xf61   :  { %p2310_p9 = pnand %p2308_p8, %p2305_p7 }
 0xf63   :  { %2313 = shalt.err (!%p2310_p9)
}
 0xf64   :  { %1755 = dma.vmem_to_hbm [thread:$0]  %s1750_s7, 256, %s2601_s5, [#allocation5], %s2321_s28, %s2321_s28, %s2322_s29  }
 0xf65   :  { %2318 = dma.done.wait [#allocation5], 256  }
 0xf66   :  { %2319 = vsyncadd [#allocation5], 4294967040 }
 0xf67   :  { %1759 = vsyncpa [#allocation4], 1 }
 0xf68   :  { %1760 = vsyncpa [#allocation7], 1 }
 0xf69   :  { %1761 = vsyncpa [#allocation5], 1 }

</bundles_post_ra>
